<compile_context>
chip_gen: v7x
topology: tpu7x:2x2x1
jax: 0.10.0
libtpu: 0.0.40
codegen_flags: <defaults>
</compile_context>

<pallas_src>
import functools

import jax
import jax.numpy as jnp
from jax import lax
from jax.experimental import pallas as pl
from jax.experimental.pallas import tpu as pltpu

LANE = 128
SUBLANE = 8


# ----------------------------- Pallas kernel ---------------------------------

def _fused_clip_score_kernel(tok_ref, img_ref, wimg_ref, table_ref, o_ref, acc_ref,
                             *, n_txt, n_tok_per_txt):
    # tok_ref:   (T*L,)   i32  SMEM (scalar prefetch)
    # img_ref:   (B, tk)  f32  VMEM tile (K-grid)
    # wimg_ref:  (tk, Dp) bf16 VMEM tile (K-grid)
    # table_ref: (Vp, Dp) f32  VMEM (resident; (tok_emb @ w_txt)/L, zero-padded)
    # o_ref:     (1, Dp)  f32  all-pairs similarity sum, broadcast across lanes
    # acc_ref:   (B, Dp)  f32  image-feature accumulator scratch
    k = pl.program_id(0)
    nk = pl.num_programs(0)
    dp = o_ref.shape[-1]

    @pl.when(k == 0)
    def _():
        acc_ref[...] = jnp.zeros_like(acc_ref)

    # K-tiled image projection; cast the image tile to bf16 in-kernel (f32 acc).
    acc_ref[...] += jnp.dot(img_ref[...].astype(jnp.bfloat16), wimg_ref[...],
                            preferred_element_type=jnp.float32)

    @pl.when(k == nk - 1)
    def _():
        # ---- text branch: per-text sum of folded-table rows (== mean(emb)@w_txt),
        # normalize, and reduce over texts.  Static trip counts -> unrolled.
        s_txt = jnp.zeros((1, dp), jnp.float32)
        for t in range(n_txt):
            feat = jnp.zeros((1, dp), jnp.float32)
            for l in range(n_tok_per_txt):
                tok = tok_ref[t * n_tok_per_txt + l]
                feat = feat + table_ref[pl.ds(tok, 1), :]
            # Row-wise L2 norm via rsqrt (EUP).  No epsilon (matches x / x.norm()).
            s_txt = s_txt + feat * lax.rsqrt(
                jnp.sum(feat * feat, axis=-1, keepdims=True))

        # ---- image branch: normalize accumulated features, reduce over batch.
        img_f = acc_ref[...]
        img_f = img_f * lax.rsqrt(jnp.sum(img_f * img_f, axis=-1, keepdims=True))
        s_img = jnp.sum(img_f, axis=0, keepdims=True)

        # sum_{b,t} <img_b, txt_t>  ==  <sum_b img_b, sum_t txt_t>
        total = jnp.sum(s_img * s_txt, axis=-1, keepdims=True)       # (1, 1)
        o_ref[...] = jnp.broadcast_to(total, o_ref.shape)            # lane-dense store


def _fused_score_sum(tokens_flat, img_flat, w_img, table, *, n_txt, n_tok_per_txt, tk):
    """Single fused pallas_call; returns the scalar all-pairs similarity sum."""
    b, kp = img_flat.shape
    dp = w_img.shape[1]
    vp = table.shape[0]
    nk = kp // tk

    kernel = functools.partial(_fused_clip_score_kernel,
                               n_txt=n_txt, n_tok_per_txt=n_tok_per_txt)

    # Double-buffered image / weight tiles + resident table / accumulator / out.
    need = 2 * (b * tk * 4 + tk * dp * 2) + vp * dp * 4 + b * dp * 4 + dp * 4
    vmem_limit = int(min(max(2 * need, 32 << 20), 56 << 20))

    cost = pl.CostEstimate(
        flops=2 * b * kp * dp + 2 * n_txt * n_tok_per_txt * dp,
        transcendentals=b + n_txt,
        bytes_accessed=b * kp * 4 + kp * dp * 2 + vp * dp * 4 + dp * 4)

    out = pl.pallas_call(
        kernel,
        out_shape=jax.ShapeDtypeStruct((1, dp), jnp.float32),
        grid_spec=pltpu.PrefetchScalarGridSpec(
            num_scalar_prefetch=1,
            grid=(nk,),
            in_specs=[
                pl.BlockSpec((b, tk), lambda k, tok: (0, k)),     # image (f32)
                pl.BlockSpec((tk, dp), lambda k, tok: (k, 0)),    # folded weight (bf16)
                pl.BlockSpec((vp, dp), lambda k, tok: (0, 0)),    # folded text table (f32)
            ],
            out_specs=pl.BlockSpec((1, dp), lambda k, tok: (0, 0)),
            scratch_shapes=[pltpu.VMEM((b, dp), jnp.float32)],
        ),
        compiler_params=pltpu.CompilerParams(
            dimension_semantics=("arbitrary",),     # K is a reduction axis
            vmem_limit_bytes=vmem_limit),
        cost_estimate=cost,
    )(tokens_flat, img_flat, w_img, table)
    return out[0, 0]


# --------------------------- offline preprocessing ---------------------------

def _pool_matrix(n_in, scale, pool_k):
    """A[i, r] = (1/k) * #{p in [i*k, i*k+k) : p // scale == r}  -> (n_out, n_in)."""
    n_out = (n_in * scale) // pool_k
    cols = jnp.arange(n_out)[:, None] * pool_k + jnp.arange(pool_k)[None, :]
    src = cols // scale                                            # (n_out, k)
    onehot = (src[:, :, None] == jnp.arange(n_in)[None, None, :])
    return onehot.astype(jnp.float32).sum(axis=1) / pool_k


def _pick_tk(kp, cap):
    """Largest multiple-of-128 divisor of kp not exceeding cap (>= 128)."""
    best = LANE
    t = LANE
    while t <= min(kp, cap):
        if kp % t == 0:
            best = t
        t += LANE
    return best


def prepare_params(params, image_shape, stylegan_size, seq_len, tk_cap=2048):
    """Shape-only constants, computed once (outside the per-call hot path).

    tk_cap: per-generation K-tile cap.  2048 is safe on v5e/v6e/v7x; sweep
    {2048, 4096, 8192} on v6e (raise vmem_limit accordingly), keep ~2048 on v7x.
    """
    scale = 7
    pool_k = stylegan_size // 32
    _, c, h, w = image_shape
    hp = (h * scale) // pool_k
    wp = (w * scale) // pool_k

    a_h = _pool_matrix(h, scale, pool_k)                           # (Hp, H)
    a_w = _pool_matrix(w, scale, pool_k)                           # (Wp, W)

    d = params["w_img"].shape[1]
    dp = max(LANE, ((d + LANE - 1) // LANE) * LANE)                # lane-dense N
    # (for real D=512/768 this is already a multiple of 256 -> full v6e/v7x MXU width)

    # Fold upsample(x7) + avgpool(k) into the image projection weight (exact).
    w4 = params["w_img"].reshape(c, hp, wp, d)
    w_img_folded = jnp.einsum("ph,qw,cpqd->chwd", a_h, a_w, w4).reshape(c * h * w, d)
    k_img = c * h * w
    kp = ((k_img + LANE - 1) // LANE) * LANE                       # K padded for tiling
    w_img_p = jnp.zeros((kp, dp), jnp.float32).at[:k_img, :d].set(w_img_folded)
    w_img_p = w_img_p.astype(jnp.bfloat16)

    # Fold the text projection + token-mean scale into the embedding table (exact).
    table = (params["tok_emb"] @ params["w_txt"]) / float(seq_len)
    v = table.shape[0]
    vp = max(SUBLANE, ((v + SUBLANE - 1) // SUBLANE) * SUBLANE)
    table_p = jnp.zeros((vp, dp), jnp.float32).at[:v, :d].set(table)

    tk = _pick_tk(kp, tk_cap)
    return {"w_img": w_img_p, "table": table_p, "k": k_img, "kp": kp,
            "tk": tk, "dp": dp}


# -------------------------------- forward ------------------------------------

@functools.partial(jax.jit,
                   static_argnames=("kp", "n_txt", "n_tok_per_txt", "tk", "avg"))
def _forward_impl(image, tokens_flat, w_img, table, *, kp, n_txt, n_tok_per_txt,
                  tk, avg):
    b = image.shape[0]
    img_flat = image.reshape(b, -1)                  # layout-preserving, no copy
    k_img = img_flat.shape[1]
    if kp != k_img:                                  # zero-pad K (exact: weight rows are zero)
        img_flat = jnp.pad(img_flat, ((0, 0), (0, kp - k_img)))
    total = _fused_score_sum(tokens_flat, img_flat, w_img, table,
                             n_txt=n_txt, n_tok_per_txt=n_tok_per_txt, tk=tk)
    if avg:
        return total / (b * n_txt)
    return total, b


def clip_score_forward(image, text_tokens, prepared, avg=True):
    """Mirrors CLIPScore.forward: avgpool(upsample(image)) -> encode -> normalize
    -> (img @ txt.T).mean()  (or (sum, batch_size) when avg=False).

    For best MXU/sublane utilization, batch multiple metric updates so B is a
    multiple of 16 (ideally 128+) before calling this.
    """
    t, l = text_tokens.shape
    # TODO(synk): clip.tokenize is host-side string tokenization (no Pallas
    # equivalent); the kernel takes integer token ids directly.
    tokens_flat = text_tokens.reshape(-1).astype(jnp.int32)
    return _forward_impl(image, tokens_flat, prepared["w_img"], prepared["table"],
                         kp=prepared["kp"], n_txt=t, n_tok_per_txt=l,
                         tk=prepared["tk"], avg=avg)


# --------------------------- pure-JAX reference ------------------------------

def _reference(image, text_tokens, params, stylegan_size):
    scale = 7
    pool_k = stylegan_size // 32
    up = jnp.repeat(jnp.repeat(image, scale, axis=2), scale, axis=3)
    b, c, hu, wu = up.shape
    hp, wp = hu // pool_k, wu // pool_k
    pooled = up[:, :, :hp * pool_k, :wp * pool_k].reshape(
        b, c, hp, pool_k, wp, pool_k).mean(axis=(3, 5))
    img_f = pooled.reshape(b, -1) @ params["w_img"]
    img_f = img_f / jnp.linalg.norm(img_f, axis=-1, keepdims=True)
    txt_f = jnp.take(params["tok_emb"], text_tokens, axis=0).mean(axis=1) @ params["w_txt"]
    txt_f = txt_f / jnp.linalg.norm(txt_f, axis=-1, keepdims=True)
    return (img_f @ txt_f.T).mean()


# --------------------------------- main --------------------------------------

if __name__ == "__main__":
    key = jax.random.PRNGKey(0)
    k_img, k_tok, k_wimg, k_wtxt, k_emb = jax.random.split(key, 5)

    # small, module-consistent shapes
    B, C, H, W = 2, 3, 16, 16
    stylegan_size = 64                    # -> AvgPool2d kernel_size = 2
    scale, pool_k = 7, stylegan_size // 32
    Hp = (H * scale) // pool_k            # 56
    Wp = (W * scale) // pool_k            # 56
    D = 32                                # synthetic CLIP embed dim
    T, L, V, Dm = 2, 8, 64, 32            # texts, tokens/text, vocab, text hidden

    image = jax.random.normal(k_img, (B, C, H, W), jnp.float32)
    text_tokens = jax.random.randint(k_tok, (T, L), 0, V)

    params = {
        "w_img": 0.02 * jax.random.normal(k_wimg, (C * Hp * Wp, D), jnp.float32),
        "w_txt": 0.02 * jax.random.normal(k_wtxt, (Dm, D), jnp.float32),
        "tok_emb": 0.02 * jax.random.normal(k_emb, (V, Dm), jnp.float32),
    }

    prepared = prepare_params(params, image.shape, stylegan_size, seq_len=L)

    score = clip_score_forward(image, text_tokens, prepared, avg=True)
    score = jax.block_until_ready(score)

    ref = jax.block_until_ready(_reference(image, text_tokens, params, stylegan_size))
    assert jnp.allclose(score, ref, atol=1e-2, rtol=1e-2), (score, ref)

    # also exercise the avg=False path (sum, batch_size) used by update()
    total, count = clip_score_forward(image, text_tokens, prepared, avg=False)
    jax.block_until_ready(total)

    print("KERNEL_OK")
</pallas_src>

<mosaic_0001>
module attributes {stable_mosaic.version = 11 : i64} {
  func.func @_fused_clip_score_kernel(%arg0: i32, %arg1: memref<16xi32, #tpu.memory_space<smem>>, %arg2: memref<2x768xf32, #tpu.memory_space<vmem>>, %arg3: memref<768x128xbf16, #tpu.memory_space<vmem>>, %arg4: memref<64x128xf32, #tpu.memory_space<vmem>>, %arg5: memref<1x128xf32, #tpu.memory_space<vmem>>, %arg6: memref<2x128xf32, #tpu.memory_space<vmem>>) attributes {dimension_semantics = [#tpu.dimension_semantics<arbitrary>], iteration_bounds = array<i64: 1>, scalar_prefetch = 1 : i64, scratch_operands = 1 : i64, tpu.core_type = #tpu.core_type<tc>, window_params = [{transform_indices = @transform_0, window_bounds = array<i64: 2, 768>}, {transform_indices = @transform_1, window_bounds = array<i64: 768, 128>}, {pipeline_mode = #tpu.pipeline_mode<synchronous>, transform_indices = @transform_2, window_bounds = array<i64: 64, 128>}, {pipeline_mode = #tpu.pipeline_mode<synchronous>, transform_indices = @transform_3, window_bounds = array<i64: 1, 128>}]} {
    %c0_i32 = arith.constant 0 : i32
    %0 = arith.cmpi eq, %arg0, %c0_i32 : i32
    %1 = arith.extui %0 : i1 to i32
    %c0_i32_0 = arith.constant 0 : i32
    %2 = arith.cmpi ne, %1, %c0_i32_0 : i32
    scf.if %2 {
      %cst_10 = arith.constant 0.000000e+00 : f32
      %13 = vector.broadcast %cst_10 : f32 to vector<2x128xf32>
      %c0_11 = arith.constant 0 : index
      %c0_12 = arith.constant 0 : index
      %14 = vector.load %arg6[%c0_11, %c0_12] : memref<2x128xf32, #tpu.memory_space<vmem>>, vector<2x128xf32>
      tpu.vector_store %arg6[%c0_11, %c0_12], %13 {strides = array<i32>} : memref<2x128xf32, #tpu.memory_space<vmem>>, vector<2x128xf32>,
    } else {
    }
    %c0 = arith.constant 0 : index
    %c0_1 = arith.constant 0 : index
    %3 = vector.load %arg6[%c0, %c0_1] : memref<2x128xf32, #tpu.memory_space<vmem>>, vector<2x128xf32>
    %c0_2 = arith.constant 0 : index
    %c0_3 = arith.constant 0 : index
    %4 = vector.load %arg2[%c0_2, %c0_3] : memref<2x768xf32, #tpu.memory_space<vmem>>, vector<2x768xf32>
    %5 = arith.truncf %4 : vector<2x768xf32> to vector<2x768xbf16>
    %c0_4 = arith.constant 0 : index
    %c0_5 = arith.constant 0 : index
    %6 = vector.load %arg3[%c0_4, %c0_5] : memref<768x128xbf16, #tpu.memory_space<vmem>>, vector<768x128xbf16>
    %cst = arith.constant dense<0.000000e+00> : vector<2x128xf32>
    %7 = tpu.matmul %5, %6, %cst {dimension_numbers = #tpu.dot_dimension_numbers<[1], [0], [0], [1], [0, 0, 1, 1], [], []>} : vector<2x768xbf16>, vector<768x128xbf16>, vector<2x128xf32> -> vector<2x128xf32>
    %8 = arith.addf %3, %7 : vector<2x128xf32>
    %c0_6 = arith.constant 0 : index
    %c0_7 = arith.constant 0 : index
    %9 = vector.load %arg6[%c0_6, %c0_7] : memref<2x128xf32, #tpu.memory_space<vmem>>, vector<2x128xf32>
    tpu.vector_store %arg6[%c0_6, %c0_7], %8 {strides = array<i32>} : memref<2x128xf32, #tpu.memory_space<vmem>>, vector<2x128xf32>,
    %c0_i32_8 = arith.constant 0 : i32
    %10 = arith.cmpi eq, %arg0, %c0_i32_8 : i32
    %11 = arith.extui %10 : i1 to i32
    %c0_i32_9 = arith.constant 0 : i32
    %12 = arith.cmpi ne, %11, %c0_i32_9 : i32
    scf.if %12 {
      %cst_10 = arith.constant 0.000000e+00 : f32
      %13 = vector.broadcast %cst_10 : f32 to vector<1x128xf32>
      %cst_11 = arith.constant 0.000000e+00 : f32
      %14 = vector.broadcast %cst_11 : f32 to vector<1x128xf32>
      %c0_12 = arith.constant 0 : index
      %15 = memref.load %arg1[%c0_12] : memref<16xi32, #tpu.memory_space<smem>>
      %16 = arith.index_cast %15 : i32 to index
      %c0_13 = arith.constant 0 : index
      %17 = vector.load %arg4[%16, %c0_13] : memref<64x128xf32, #tpu.memory_space<vmem>>, vector<1x128xf32>
      %18 = arith.addf %14, %17 : vector<1x128xf32>
      %c1 = arith.constant 1 : index
      %19 = memref.load %arg1[%c1] : memref<16xi32, #tpu.memory_space<smem>>
      %20 = arith.index_cast %19 : i32 to index
      %c0_14 = arith.constant 0 : index
      %21 = vector.load %arg4[%20, %c0_14] : memref<64x128xf32, #tpu.memory_space<vmem>>, vector<1x128xf32>
      %22 = arith.addf %18, %21 : vector<1x128xf32>
      %c2 = arith.constant 2 : index
      %23 = memref.load %arg1[%c2] : memref<16xi32, #tpu.memory_space<smem>>
      %24 = arith.index_cast %23 : i32 to index
      %c0_15 = arith.constant 0 : index
      %25 = vector.load %arg4[%24, %c0_15] : memref<64x128xf32, #tpu.memory_space<vmem>>, vector<1x128xf32>
      %26 = arith.addf %22, %25 : vector<1x128xf32>
      %c3 = arith.constant 3 : index
      %27 = memref.load %arg1[%c3] : memref<16xi32, #tpu.memory_space<smem>>
      %28 = arith.index_cast %27 : i32 to index
      %c0_16 = arith.constant 0 : index
      %29 = vector.load %arg4[%28, %c0_16] : memref<64x128xf32, #tpu.memory_space<vmem>>, vector<1x128xf32>
      %30 = arith.addf %26, %29 : vector<1x128xf32>
      %c4 = arith.constant 4 : index
      %31 = memref.load %arg1[%c4] : memref<16xi32, #tpu.memory_space<smem>>
      %32 = arith.index_cast %31 : i32 to index
      %c0_17 = arith.constant 0 : index
      %33 = vector.load %arg4[%32, %c0_17] : memref<64x128xf32, #tpu.memory_space<vmem>>, vector<1x128xf32>
      %34 = arith.addf %30, %33 : vector<1x128xf32>
      %c5 = arith.constant 5 : index
      %35 = memref.load %arg1[%c5] : memref<16xi32, #tpu.memory_space<smem>>
      %36 = arith.index_cast %35 : i32 to index
      %c0_18 = arith.constant 0 : index
      %37 = vector.load %arg4[%36, %c0_18] : memref<64x128xf32, #tpu.memory_space<vmem>>, vector<1x128xf32>
      %38 = arith.addf %34, %37 : vector<1x128xf32>
      %c6 = arith.constant 6 : index
      %39 = memref.load %arg1[%c6] : memref<16xi32, #tpu.memory_space<smem>>
      %40 = arith.index_cast %39 : i32 to index
      %c0_19 = arith.constant 0 : index
      %41 = vector.load %arg4[%40, %c0_19] : memref<64x128xf32, #tpu.memory_space<vmem>>, vector<1x128xf32>
      %42 = arith.addf %38, %41 : vector<1x128xf32>
      %c7 = arith.constant 7 : index
      %43 = memref.load %arg1[%c7] : memref<16xi32, #tpu.memory_space<smem>>
      %44 = arith.index_cast %43 : i32 to index
      %c0_20 = arith.constant 0 : index
      %45 = vector.load %arg4[%44, %c0_20] : memref<64x128xf32, #tpu.memory_space<vmem>>, vector<1x128xf32>
      %46 = arith.addf %42, %45 : vector<1x128xf32>
      %47 = arith.mulf %46, %46 : vector<1x128xf32>
      %cst_21 = arith.constant dense<0.000000e+00> : vector<1xf32>
      %48 = vector.multi_reduction <add>, %47, %cst_21 [1] : vector<1x128xf32> to vector<1xf32>
      %49 = vector.shape_cast %48 : vector<1xf32> to vector<1x1xf32>
      %50 = math.rsqrt %49 : vector<1x1xf32>
      %51 = vector.broadcast %50 : vector<1x1xf32> to vector<1x128xf32>
      %52 = arith.mulf %46, %51 : vector<1x128xf32>
      %53 = arith.addf %13, %52 : vector<1x128xf32>
      %cst_22 = arith.constant 0.000000e+00 : f32
      %54 = vector.broadcast %cst_22 : f32 to vector<1x128xf32>
      %c8 = arith.constant 8 : index
      %55 = memref.load %arg1[%c8] : memref<16xi32, #tpu.memory_space<smem>>
      %56 = arith.index_cast %55 : i32 to index
      %c0_23 = arith.constant 0 : index
      %57 = vector.load %arg4[%56, %c0_23] : memref<64x128xf32, #tpu.memory_space<vmem>>, vector<1x128xf32>
      %58 = arith.addf %54, %57 : vector<1x128xf32>
      %c9 = arith.constant 9 : index
      %59 = memref.load %arg1[%c9] : memref<16xi32, #tpu.memory_space<smem>>
      %60 = arith.index_cast %59 : i32 to index
      %c0_24 = arith.constant 0 : index
      %61 = vector.load %arg4[%60, %c0_24] : memref<64x128xf32, #tpu.memory_space<vmem>>, vector<1x128xf32>
      %62 = arith.addf %58, %61 : vector<1x128xf32>
      %c10 = arith.constant 10 : index
      %63 = memref.load %arg1[%c10] : memref<16xi32, #tpu.memory_space<smem>>
      %64 = arith.index_cast %63 : i32 to index
      %c0_25 = arith.constant 0 : index
      %65 = vector.load %arg4[%64, %c0_25] : memref<64x128xf32, #tpu.memory_space<vmem>>, vector<1x128xf32>
      %66 = arith.addf %62, %65 : vector<1x128xf32>
      %c11 = arith.constant 11 : index
      %67 = memref.load %arg1[%c11] : memref<16xi32, #tpu.memory_space<smem>>
      %68 = arith.index_cast %67 : i32 to index
      %c0_26 = arith.constant 0 : index
      %69 = vector.load %arg4[%68, %c0_26] : memref<64x128xf32, #tpu.memory_space<vmem>>, vector<1x128xf32>
      %70 = arith.addf %66, %69 : vector<1x128xf32>
      %c12 = arith.constant 12 : index
      %71 = memref.load %arg1[%c12] : memref<16xi32, #tpu.memory_space<smem>>
      %72 = arith.index_cast %71 : i32 to index
      %c0_27 = arith.constant 0 : index
      %73 = vector.load %arg4[%72, %c0_27] : memref<64x128xf32, #tpu.memory_space<vmem>>, vector<1x128xf32>
      %74 = arith.addf %70, %73 : vector<1x128xf32>
      %c13 = arith.constant 13 : index
      %75 = memref.load %arg1[%c13] : memref<16xi32, #tpu.memory_space<smem>>
      %76 = arith.index_cast %75 : i32 to index
      %c0_28 = arith.constant 0 : index
      %77 = vector.load %arg4[%76, %c0_28] : memref<64x128xf32, #tpu.memory_space<vmem>>, vector<1x128xf32>
      %78 = arith.addf %74, %77 : vector<1x128xf32>
      %c14 = arith.constant 14 : index
      %79 = memref.load %arg1[%c14] : memref<16xi32, #tpu.memory_space<smem>>
      %80 = arith.index_cast %79 : i32 to index
      %c0_29 = arith.constant 0 : index
      %81 = vector.load %arg4[%80, %c0_29] : memref<64x128xf32, #tpu.memory_space<vmem>>, vector<1x128xf32>
      %82 = arith.addf %78, %81 : vector<1x128xf32>
      %c15 = arith.constant 15 : index
      %83 = memref.load %arg1[%c15] : memref<16xi32, #tpu.memory_space<smem>>
      %84 = arith.index_cast %83 : i32 to index
      %c0_30 = arith.constant 0 : index
      %85 = vector.load %arg4[%84, %c0_30] : memref<64x128xf32, #tpu.memory_space<vmem>>, vector<1x128xf32>
      %86 = arith.addf %82, %85 : vector<1x128xf32>
      %87 = arith.mulf %86, %86 : vector<1x128xf32>
      %cst_31 = arith.constant dense<0.000000e+00> : vector<1xf32>
      %88 = vector.multi_reduction <add>, %87, %cst_31 [1] : vector<1x128xf32> to vector<1xf32>
      %89 = vector.shape_cast %88 : vector<1xf32> to vector<1x1xf32>
      %90 = math.rsqrt %89 : vector<1x1xf32>
      %91 = vector.broadcast %90 : vector<1x1xf32> to vector<1x128xf32>
      %92 = arith.mulf %86, %91 : vector<1x128xf32>
      %93 = arith.addf %53, %92 : vector<1x128xf32>
      %c0_32 = arith.constant 0 : index
      %c0_33 = arith.constant 0 : index
      %94 = vector.load %arg6[%c0_32, %c0_33] : memref<2x128xf32, #tpu.memory_space<vmem>>, vector<2x128xf32>
      %95 = arith.mulf %94, %94 : vector<2x128xf32>
      %cst_34 = arith.constant dense<0.000000e+00> : vector<2xf32>
      %96 = vector.multi_reduction <add>, %95, %cst_34 [1] : vector<2x128xf32> to vector<2xf32>
      %97 = vector.shape_cast %96 : vector<2xf32> to vector<2x1xf32>
      %98 = math.rsqrt %97 : vector<2x1xf32>
      %99 = vector.broadcast %98 : vector<2x1xf32> to vector<2x128xf32>
      %100 = arith.mulf %94, %99 : vector<2x128xf32>
      %cst_35 = arith.constant dense<0.000000e+00> : vector<128xf32>
      %101 = vector.multi_reduction <add>, %100, %cst_35 [0] : vector<2x128xf32> to vector<128xf32>
      %102 = vector.shape_cast %101 : vector<128xf32> to vector<1x128xf32>
      %103 = arith.mulf %102, %93 : vector<1x128xf32>
      %cst_36 = arith.constant dense<0.000000e+00> : vector<1xf32>
      %104 = vector.multi_reduction <add>, %103, %cst_36 [1] : vector<1x128xf32> to vector<1xf32>
      %105 = vector.shape_cast %104 : vector<1xf32> to vector<1x1xf32>
      %106 = vector.shape_cast %105 : vector<1x1xf32> to vector<1x1xf32>
      %107 = vector.broadcast %106 : vector<1x1xf32> to vector<1x128xf32>
      %c0_37 = arith.constant 0 : index
      %c0_38 = arith.constant 0 : index
      %108 = vector.load %arg5[%c0_37, %c0_38] : memref<1x128xf32, #tpu.memory_space<vmem>>, vector<1x128xf32>
      tpu.vector_store %arg5[%c0_37, %c0_38], %107 {strides = array<i32>} : memref<1x128xf32, #tpu.memory_space<vmem>>, vector<1x128xf32>,
    } else {
    }
    return
  }
  func.func @transform_0(%arg0: i32, %arg1: memref<16xi32, #tpu.memory_space<smem>>) -> (i32, i32) {
    %c0_i32 = arith.constant 0 : i32
    %c0_i32_0 = arith.constant 0 : i32
    return %c0_i32, %arg0 : i32, i32
  }
  func.func @transform_1(%arg0: i32, %arg1: memref<16xi32, #tpu.memory_space<smem>>) -> (i32, i32) {
    %c0_i32 = arith.constant 0 : i32
    %c0_i32_0 = arith.constant 0 : i32
    return %arg0, %c0_i32 : i32, i32
  }
  func.func @transform_2(%arg0: i32, %arg1: memref<16xi32, #tpu.memory_space<smem>>) -> (i32, i32) {
    %c0_i32 = arith.constant 0 : i32
    %c0_i32_0 = arith.constant 0 : i32
    %c0_i32_1 = arith.constant 0 : i32
    return %c0_i32, %c0_i32_0 : i32, i32
  }
  func.func @transform_3(%arg0: i32, %arg1: memref<16xi32, #tpu.memory_space<smem>>) -> (i32, i32) {
    %c0_i32 = arith.constant 0 : i32
    %c0_i32_0 = arith.constant 0 : i32
    %c0_i32_1 = arith.constant 0 : i32
    return %c0_i32, %c0_i32_0 : i32, i32
  }
}

</mosaic_0001>

<bundles_post_ra>
// kernel: _forward_impl.1
= control target key start
LH: loop header
LB: loop body
LE: loop exit
PB: predicated region body
PF: predicated region fallthrough
CT: control target
= control target key end

     0   :  { %s1052_s0 = inlined_call_operand.vmem [shape: s32[16], index: 0, kind: input, shape index: {}]   ;;  %s1053_s1 = inlined_call_operand.vmem [shape: f32[2,768], index: 1, kind: input, shape index: {}]   ;;  %s1054_s2 = inlined_call_operand.hbm [shape: bf16[768,128], index: 2, kind: input, shape index: {}]   ;;  %s1055_s3 = inlined_call_operand.vmem [shape: f32[64,128], index: 3, kind: input, shape index: {}]   ;;  %s1056_s4 = inlined_call_operand.vmem [shape: f32[1,128], index: 4, kind: output, shape index: {}]  }
   0x1   :  { %s9_s17 = sshll.u32 %s1052_s0, 4  ;;  %s10_s17 = int_to_ptr.vmem [resolvable:$true] %s9_s17 }
   0x2   :  { %s903_s18 = scalar_lea.vmem %s10_s17, 16  ;;  %p908_p1 = scmp.lt.s32.totalorder %s10_s17, %s10_s17 }
   0x3   :  { %p904_p0 = scmp.ne.s32.totalorder %s10_s17, %s903_s18  ;;  %p909_p2 = scmp.lt.s32.totalorder %s903_s18, %s903_s18 }
   0x5   :  { %p910_p3 = por %p909_p2, %p908_p1 }
   0x7   :  { %p911_p4 = pnand %p910_p3, %p904_p0 }
   0x9   :  { %914 = shalt.err (!%p911_p4)  }
   0xa   :  { %s941_s19 = smov [#allocation4]  }
   0xb   :  { %12 = dma.vmem_to_smem %s10_s17, 16, %s941_s19, [#allocation3] }
   0xc   :  { %937 = dma.done.wait [#allocation3], 16 }
   0xd   :  { %938 = vsyncadd [#allocation3], 4294967280 }
   0xe   :  { %14 = sfence }
   0xf   :  { %15 = vsyncpa [#allocation6], 0  ;;  %s942_s20 = smov [#allocation5]   ;;  %s915_s0 = scalar_lea.hbm %s1054_s2, 6144 }
  0x10   :  { %s23_s21 = sshll.u32 %s942_s20, 4  ;;  %p916_p5 = scmp.ne.s32.totalorder %s1054_s2, %s915_s0  ;;  %s24_s21 = int_to_ptr.vmem [resolvable:$true] %s23_s21 }
  0x11   :  { %p919_p6 = scmp.lt.u32.totalorder %s915_s0, %s1054_s2 }
  0x13   :  { %p921_p7 = pnand %p919_p6, %p916_p5 }
  0x15   :  { %924 = shalt.err (!%p921_p7)
}
  0x16   :  { %s925_s28 = scalar_lea.vmem %s24_s21, 6144  ;;  %p930_p9 = scmp.lt.s32.totalorder %s24_s21, %s24_s21 }
  0x17   :  { %p926_p8 = scmp.ne.s32.totalorder %s24_s21, %s925_s28  ;;  %p931_p10 = scmp.lt.s32.totalorder %s925_s28, %s925_s28 }
  0x19   :  { %p932_p11 = por %p931_p10, %p930_p9 }
  0x1b   :  { %p933_p12 = pnand %p932_p11, %p926_p8 }
  0x1d   :  { %936 = shalt.err (!%p933_p12)
}
  0x1e   :  { %s943_s29 = smov 64   ;;  %s944_s30 = smov 4  }
  0x1f   :  { %29 = dma.hbm_to_vmem [thread:$0]  %s1054_s2, 6144, %s24_s21, [#allocation6], %s943_s29, %s943_s29, %s944_s30  }
  0x20   :  { %939 = dma.done.wait [#allocation6], 6144  }
  0x21   :  { %940 = vsyncadd [#allocation6], 4294961152  ;;  %v848_v0 = vld [vmem:[#allocation5 + $0x40] sm:$0xff]   ;;  %v852_v4 = vld [vmem:[#allocation5 + $0x48] sm:$0xff]   ;;  %v945_v22 = vmov 1983009808   ;;  %v50_v24 = vlaneseq }
  0x22   :  { %v849_v1 = vld [vmem:[#allocation5 + $0xc0] sm:$0xff]   ;;  %776 = vmatprep.subr.bf16.mxu0 %v848_v0  ;;  %v853_v5 = vld [vmem:[#allocation5 + $0xc8] sm:$0xff]   ;;  %v856_v8 = vld [vmem:[#allocation5 + $0x50] sm:$0xff]   ;;  %v48_v23 = vunpack.c.l.s4 %v945_v22  ;;  %s769_s10 = sld [smem:[#allocation4 + $0x9]]  ;;  %s770_s11 = sld [smem:[#allocation4 + $0xa]]  ;;  %vm625_vm0 = vcmask 1040384  }
  0x23   :  { %v850_v2 = vld [vmem:[#allocation5] sm:$0xff]   ;;  %798 = vmatprep.subr.bf16.mxu1 %v849_v1  ;;  %v854_v6 = vld [vmem:[#allocation5 + $0x8] sm:$0xff]   ;;  %v857_v9 = vld [vmem:[#allocation5 + $0xd0] sm:$0xff]   ;;  %v51_v30 = vshrl.u32 %v50_v24, 7  ;;  %s771_s12 = sld [smem:[#allocation4 + $0xb]]  ;;  %s772_s19 = sld [smem:[#allocation4 + $0xc]] }
  0x24   :  { %v851_v3 = vld [vmem:[#allocation5 + $0x80] sm:$0xff]   ;;  %777 = vmatpush3.bf16.msra.mxu0 %v850_v2  ;;  %v855_v7 = vld [vmem:[#allocation5 + $0x88] sm:$0xff]   ;;  %v858_v10 = vld [vmem:[#allocation5 + $0x10] sm:$0xff]   ;;  %v49_v29 = vunpack.c.0.s8 %v48_v23  ;;  %s773_s23 = sld [smem:[#allocation4 + $0xd]]  ;;  %s774_s26 = sld [smem:[#allocation4 + $0xe]]  ;;  %vm673_vm1 = vcmask 1041408  }
  0x25   :  { %799 = vmatpush3.bf16.msra.mxu1 %v851_v3  ;;  %778 = vmatprep.subr.bf16.mxu0 %v852_v4  ;;  %v859_v11 = vld [vmem:[#allocation5 + $0x90] sm:$0xff]   ;;  %v860_v12 = vld [vmem:[#allocation5 + $0x58] sm:$0xff]   ;;  %v864_v16 = vld [vmem:[#allocation5 + $0x60] sm:$0xff]   ;;  %v946_v4 = vmov 0.0   ;;  %s775_s27 = sld [smem:[#allocation4 + $0xf]]  ;;  %s761_s13 = sld [smem:[#allocation4 + $0x1]] }
  0x26   :  { %800 = vmatprep.subr.bf16.mxu1 %v853_v5  ;;  %v861_v13 = vld [vmem:[#allocation5 + $0xd8] sm:$0xff]   ;;  %v865_v17 = vld [vmem:[#allocation5 + $0xe0] sm:$0xff]   ;;  %v868_v20 = vld [vmem:[#allocation5 + $0x68] sm:$0xff]   ;;  %v52_v35 = vsub.s32 %v49_v29, %v51_v30  ;;  %40 = vst [vmem:[#allocation2] sm:$0x3] %v946_v4  ;;  %s762_s14 = sld [smem:[#allocation4 + $0x2]] }
  0x27   :  { %v862_v14 = vld [vmem:[#allocation5 + $0x18] sm:$0xff]   ;;  %v866_v18 = vld [vmem:[#allocation5 + $0x20] sm:$0xff]   ;;  %v869_v21 = vld [vmem:[#allocation5 + $0xe8] sm:$0xff]   ;;  %s764_s24 = sld [smem:[#allocation4 + $0x4]]  ;;  %s765_s28 = sld [smem:[#allocation4 + $0x5]] }
  0x28   :  { %779 = vmatpush3.bf16.msra.mxu0 %v854_v6  ;;  %v863_v15 = vld [vmem:[#allocation5 + $0x98] sm:$0xff]   ;;  %v867_v19 = vld [vmem:[#allocation5 + $0xa0] sm:$0xff]   ;;  %v870_v25 = vld [vmem:[#allocation5 + $0x28] sm:$0xff]   ;;  %s637_s18 = scalar_lea.vmem %s1055_s3, %s769_s10  ;;  %s641_s22 = scalar_lea.vmem %s1055_s3, %s770_s11 }
  0x29   :  { %801 = vmatpush3.bf16.msra.mxu1 %v855_v7  ;;  %780 = vmatprep.subr.bf16.mxu0 %v856_v8  ;;  %v871_v26 = vld [vmem:[#allocation5 + $0xa8] sm:$0xff]   ;;  %v872_v27 = vld [vmem:[#allocation5 + $0x70] sm:$0xff]   ;;  %v876_v33 = vld [vmem:[#allocation5 + $0x78] sm:$0xff]   ;;  %s645_s25 = scalar_lea.vmem %s1055_s3, %s771_s12  ;;  %s649_s30 = scalar_lea.vmem %s1055_s3, %s772_s19 }
  0x2a   :  { %802 = vmatprep.subr.bf16.mxu1 %v857_v9  ;;  %v873_v28 = vld [vmem:[#allocation5 + $0xf0] sm:$0xff]   ;;  %v877_v34 = vld [vmem:[#allocation5 + $0xf8] sm:$0xff]   ;;  %v881_v41 = vld [vmem:[#allocation5 + $0x140] sm:$0xff]   ;;  %s653_s2 = scalar_lea.vmem %s1055_s3, %s773_s23  ;;  %s657_s9 = scalar_lea.vmem %s1055_s3, %s774_s26 }
  0x2b   :  { %v874_v31 = vld [vmem:[#allocation5 + $0x30] sm:$0xff]   ;;  %v878_v36 = vld [vmem:[#allocation5 + $0x38] sm:$0xff]   ;;  %v882_v47 = vld [vmem:[#allocation5 + $0x100] sm:$0xff]   ;;  %s661_s11 = scalar_lea.vmem %s1055_s3, %s775_s27  ;;  %s592_s12 = sld [smem:[#allocation4]] }
  0x2c   :  { %781 = vmatpush3.bf16.msra.mxu0 %v858_v10  ;;  %v875_v32 = vld [vmem:[#allocation5 + $0xb0] sm:$0xff]   ;;  %v879_v37 = vld [vmem:[#allocation5 + $0xb8] sm:$0xff]   ;;  %v883_v49 = vld [vmem:[#allocation5 + $0x148] sm:$0xff]   ;;  %s597_s21 = scalar_lea.vmem %s1055_s3, %s761_s13  ;;  %s601_s0 = scalar_lea.vmem %s1055_s3, %s762_s14 }
  0x2d   :  { %803 = vmatpush3.bf16.msra.mxu1 %v859_v11  ;;  %782 = vmatprep.subr.bf16.mxu0 %v860_v12  ;;  %v42_v38 = vld [vmem:[%s1053_s1] sm:$0xff]  ;;  %v884_v51 = vld [vmem:[#allocation5 + $0x108] sm:$0xff]   ;;  %v885_v52 = vld [vmem:[#allocation5 + $0x150] sm:$0xff]   ;;  %s609_s5 = scalar_lea.vmem %s1055_s3, %s764_s24  ;;  %s766_s6 = sld [smem:[#allocation4 + $0x6]] }
  0x2e   :  { %804 = vmatprep.subr.bf16.mxu1 %v861_v13  ;;  %v53_v39 = vrot.slane %v42_v38, %v52_v35  ;;  %v46_v40 = vcombine.high %v42_v38, %v42_v38  ;;  %v886_v53 = vld [vmem:[#allocation5 + $0x110] sm:$0xff]   ;;  %v887_v54 = vld [vmem:[#allocation5 + $0x158] sm:$0xff]   ;;  %v712_v55 = vld.sshfl [vmem:[%s1053_s1 + $0x8] sm:$0x33 pattern:$0x76325410]  ;;  %s613_s8 = scalar_lea.vmem %s1055_s3, %s765_s28 }
  0x2f   :  { %v888_v56 = vld [vmem:[#allocation5 + $0x118] sm:$0xff]   ;;  %v70_v57 = vcombine.high %v712_v55, %v712_v55  ;;  %v889_v58 = vld [vmem:[#allocation5 + $0x160] sm:$0xff]   ;;  %v891_v61 = vld [vmem:[#allocation5 + $0x168] sm:$0xff]   ;;  %v81_v3 = vpack.c.bf16 %v712_v55, %v712_v55  ;;  %s768_s1 = sld [smem:[#allocation4 + $0x8]] }
  0x30   :  { %783 = vmatpush3.bf16.msra.mxu0 %v862_v14  ;;  %v61_v42 = vcombine.high %v53_v39, %v53_v39  ;;  %v60_v43 = vrot.slane %v46_v40, %v52_v35  ;;  %v77_v44 = vpack.c.bf16 %v53_v39, %v53_v39  ;;  %v890_v60 = vld [vmem:[#allocation5 + $0x120] sm:$0xff]   ;;  %v892_v62 = vld [vmem:[#allocation5 + $0x128] sm:$0xff]   ;;  %v893_v63 = vld [vmem:[#allocation5 + $0x170] sm:$0xff]  }
  0x31   :  { %805 = vmatpush3.bf16.msra.mxu1 %v863_v15  ;;  %784 = vmatprep.subr.bf16.mxu0 %v864_v16  ;;  %v82_v59 = vpack.c.bf16 %v70_v57, %v70_v57  ;;  %v894_v0 = vld [vmem:[#allocation5 + $0x130] sm:$0xff]   ;;  %v895_v1 = vld [vmem:[#allocation5 + $0x178] sm:$0xff]  }
  0x32   :  { %806 = vmatprep.subr.bf16.mxu1 %v865_v17  ;;  %v78_v45 = vpack.c.bf16 %v61_v42, %v61_v42  ;;  %v62_v46 = vcombine.high %v60_v43, %v60_v43  ;;  %v79_v48 = vpack.c.bf16 %v60_v43, %v60_v43  ;;  %v896_v2 = vld [vmem:[#allocation5 + $0x138] sm:$0xff]  }
  0x33   :  { %v638_v6 = vld [vmem:[%s637_s18] sm:$0x1]  ;;  %s593_s18 = scalar_lea.vmem %s1055_s3, %s592_s12 }
  0x34   :  { %785 = vmatpush3.bf16.msra.mxu0 %v866_v18  ;;  %499 = vmatprep.mubr.bf16.mxu0 %v78_v45  ;;  %v80_v50 = vpack.c.bf16 %v62_v46, %v62_v46  ;;  %v642_v8 = vld [vmem:[%s641_s22] sm:$0x1] }
  0x35   :  { %807 = vmatpush3.bf16.msra.mxu1 %v867_v19  ;;  %786 = vmatprep.subr.bf16.mxu0 %v868_v20  ;;  %s633_s15 = scalar_lea.vmem %s1055_s3, %s768_s1  ;;  %v646_v10 = vld [vmem:[%s645_s25] sm:$0x1] }
  0x36   :  { %808 = vmatprep.subr.bf16.mxu1 %v869_v21  ;;  %539 = vmatprep.mubr.bf16.mxu1 %v80_v50  ;;  %v634_v5 = vld [vmem:[%s633_s15] sm:$0x1]  ;;  %s763_s15 = sld [smem:[#allocation4 + $0x3]] }
  0x37   :  { %v639_v7 = vadd.f32 %v638_v6, %v634_v5  ;;  %v650_v12 = vld [vmem:[%s649_s30] sm:$0x1] }
  0x38   :  { %787 = vmatpush3.bf16.msra.mxu0 %v870_v25  ;;  %v654_v14 = vld [vmem:[%s653_s2] sm:$0x1] }
  0x39   :  { %809 = vmatpush3.bf16.msra.mxu1 %v871_v26  ;;  %788 = vmatprep.subr.bf16.mxu0 %v872_v27  ;;  %v643_v9 = vadd.f32 %v642_v8, %v639_v7  ;;  %v658_v16 = vld [vmem:[%s657_s9] sm:$0x1]  ;;  %s767_s9 = sld [smem:[#allocation4 + $0x7]] }
  0x3a   :  { %810 = vmatprep.subr.bf16.mxu1 %v873_v28  ;;  %v662_v18 = vld [vmem:[%s661_s11] sm:$0x1]  ;;  %s617_s11 = scalar_lea.vmem %s1055_s3, %s766_s6 }
  0x3b   :  { %v647_v11 = vadd.f32 %v646_v10, %v643_v9  ;;  %v610_v40 = vld [vmem:[%s609_s5] sm:$0x1] }
  0x3c   :  { %789 = vmatpush3.bf16.msra.mxu0 %v874_v31  ;;  %s605_s27 = scalar_lea.vmem %s1055_s3, %s763_s15 }
  0x3d   :  { %811 = vmatpush3.bf16.msra.mxu1 %v875_v32  ;;  %790 = vmatprep.subr.bf16.mxu0 %v876_v33  ;;  %v651_v13 = vadd.f32 %v650_v12, %v647_v11  ;;  %v594_v33 = vld [vmem:[%s593_s18] sm:$0x1] }
  0x3e   :  { %812 = vmatprep.subr.bf16.mxu1 %v877_v34  ;;  %v598_v34 = vld [vmem:[%s597_s21] sm:$0x1] }
  0x3f   :  { %v655_v15 = vadd.f32 %v654_v14, %v651_v13  ;;  %v599_v35 = vadd.f32 %v598_v34, %v594_v33  ;;  %v606_v38 = vld [vmem:[%s605_s27] sm:$0x1]  ;;  %s621_s14 = scalar_lea.vmem %s1055_s3, %s767_s9 }
  0x40   :  { %791 = vmatpush3.bf16.msra.mxu0 %v878_v36  ;;  %v602_v36 = vld [vmem:[%s601_s0] sm:$0x1] }
  0x41   :  { %813 = vmatpush3.bf16.msra.mxu1 %v879_v37  ;;  %820 = vmatprep.subr.bf16.mxu0 %v881_v41  ;;  %v659_v17 = vadd.f32 %v658_v16, %v655_v15  ;;  %v603_v37 = vadd.f32 %v602_v36, %v599_v35 }
  0x43   :  { %500 = vmatmul.mubr.bf16.vlgmr.msra.gmra.mrb[0].mxu0 %v77_v44  ;;  %v1017_v19 = vadd.f32 %v662_v18, %v659_v17  ;;  %v607_v39 = vadd.f32 %v606_v38, %v603_v37  ;;  %v614_v44 = vld [vmem:[%s613_s8] sm:$0x1] }
  0x44   :  { %821 = vmatpush3.bf16.msra.mxu0 %v882_v47  ;;  %540 = vmatmul.mubr.bf16.vlgmr.msra.gmra.mrb[0].mxu1 %v79_v48  ;;  %v41_v47 = vld [vmem:[#allocation2] sm:$0x3] }
  0x45   :  { %822 = vmatprep.subr.bf16.mxu0 %v883_v49  ;;  %579 = vmatprep.mubr.bf16.mxu0 %v82_v59  ;;  %v664_v20 = vmul.f32 %v1017_v19, %v1017_v19  ;;  %v611_v42 = vadd.f32 %v610_v40, %v607_v39 }
  0x47   :  { %v665_v21 = vsel %vm625_vm0, %v664_v20, 0.0  ;;  %v615_v50 = vadd.f32 %v614_v44, %v611_v42 }
  0x48   :  { %823 = vmatpush3.bf16.msra.mxu0 %v884_v51  ;;  %666 = vadd.xlane.f32.xlu1 %v665_v21  ;;  %v618_v51 = vld [vmem:[%s617_s11] sm:$0x1] }
  0x49   :  { %824 = vmatprep.subr.bf16.mxu0 %v885_v52 }
  0x4c   :  { %825 = vmatpush3.bf16.msra.mxu0 %v886_v53  ;;  %v619_v53 = vadd.f32 %v618_v51, %v615_v50 }
  0x4d   :  { %826 = vmatprep.subr.bf16.mxu0 %v887_v54  ;;  %v622_v54 = vld [vmem:[%s621_s14] sm:$0x1] }
  0x4e   :  { %v623_v55 = vadd.f32 %v622_v54, %v619_v53 }
  0x50   :  { %827 = vmatpush3.bf16.msra.mxu0 %v888_v56 }
  0x51   :  { %828 = vmatprep.subr.bf16.mxu0 %v889_v58  ;;  %v624_v58 = vmul.f32 %v623_v55, %v623_v55 }
  0x54   :  { %829 = vmatpush3.bf16.msra.mxu0 %v890_v60  ;;  %v626_v60 = vsel %vm625_vm0, %v624_v58, 0.0 }
  0x55   :  { %830 = vmatprep.subr.bf16.mxu0 %v891_v61 }
  0x58   :  { %831 = vmatpush3.bf16.msra.mxu0 %v892_v62 }
  0x59   :  { %832 = vmatprep.subr.bf16.mxu0 %v893_v63 }
  0x5c   :  { %833 = vmatpush3.bf16.msra.mxu0 %v894_v0 }
  0x5d   :  { %834 = vmatprep.subr.bf16.mxu0 %v895_v1 }
  0x60   :  { %835 = vmatpush3.bf16.msra.mxu0 %v896_v2 }
  0x63   :  { %580 = vmatmul.mubr.bf16.vlgmr.msra.gmra.mrb[4].mxu0 %v81_v3 }
  0xd5   :  { %v667_v62 = vpop.xlane.xlu1 %666 }
 0x116   :  { %v792_v22 = vpop.f32.mrb[0].mxu0 }
 0x117   :  { %v793_v23 = vpop.f32.mrb[1].mxu0  ;;  %v814_v24 = vpop.f32.mrb[0].mxu1 }
 0x118   :  { %v794_v25 = vadd.f32 %v793_v23, %v792_v22  ;;  %v795_v26 = vpop.f32.mrb[2].mxu0  ;;  %v815_v27 = vpop.f32.mrb[1].mxu1 }
 0x119   :  { %v796_v28 = vpop.f32.mrb[3].mxu0  ;;  %v816_v29 = vadd.f32 %v815_v27, %v814_v24  ;;  %v817_v30 = vpop.f32.mrb[2].mxu1 }
 0x11a   :  { %v818_v31 = vpop.f32.mrb[3].mxu1 }
 0x11b   :  { %v542_v32 = vadd.f32 %v816_v29, %v794_v25 }
 0x136   :  { %v836_v41 = vpop.f32.mrb[4].mxu0 }
 0x137   :  { %v837_v43 = vpop.f32.mrb[5].mxu0 }
 0x138   :  { %v838_v45 = vadd.f32 %v837_v43, %v836_v41  ;;  %v839_v46 = vpop.f32.mrb[6].mxu0 }
 0x139   :  { %v840_v48 = vpop.f32.mrb[7].mxu0 }
 0x13a   :  { %v582_v49 = vadd.f32 %v838_v45, %v542_v32 }
 0x13c   :  { %v587_v52 = vadd.f32 %v582_v49, %v41_v47 }
 0x13e   :  { %588 = vst [vmem:[#allocation2] sm:$0x3] %v587_v52 }
 0x145   :  { %v671_v56 = vld [vmem:[#allocation2] sm:$0x3] }
 0x146   :  { %v672_v57 = vmul.f32 %v671_v56, %v671_v56 }
 0x148   :  { %v674_v59 = vsel %vm673_vm1, %v672_v57, 0.0 }
 0x149   :  { %675 = vadd.xlane.f32.xlu0 %v674_v59 }
 0x14d   :  { %627 = vadd.xlane.f32.xlu0 %v626_v60 }
 0x1d6   :  { %v676_v61 = vpop.xlane.xlu0 %675 }
 0x1d7   :  { %897 = vrsqrt.f32 %v676_v61 }
 0x1d8   :  { %899 = vrsqrt.f32 %v667_v62 }
 0x1da   :  { %v628_v63 = vpop.xlane.xlu0 %627 }
 0x1db   :  { %901 = vrsqrt.f32 %v628_v63 }
 0x1e1   :  { %v898_v0 = vpop.eup %897 }
 0x1e2   :  { %v678_v1 = vmul.f32 %v898_v0, %v671_v56  ;;  %v900_v3 = vpop.eup %899 }
 0x1e3   :  { %v669_v8 = vmul.f32 %v900_v3, %v1017_v19 }
 0x1e4   :  { %v679_v2 = vsel %vm673_vm1, %v678_v1, 0.0 }
 0x1e5   :  { %v680_v4 = vrot.slane %v679_v2, 4  ;;  %v902_v5 = vpop.eup %901 }
 0x1e6   :  { %v630_v7 = vmul.f32 %v902_v5, %v623_v55 }
 0x1e7   :  { %v681_v6 = vadd.f32 %v680_v4, %v679_v2 }
 0x1e8   :  { %v670_v11 = vadd.f32 %v669_v8, %v630_v7 }
 0x1e9   :  { %v682_v9 = vrot.slane %v681_v6, 2 }
 0x1eb   :  { %v683_v10 = vadd.f32 %v682_v9, %v681_v6 }
 0x1ed   :  { %v684_v12 = vrot.slane %v683_v10, 1 }
 0x1ef   :  { %v685_v13 = vadd.f32 %v684_v12, %v683_v10 }
 0x1f1   :  { %v686_v14 = vmul.f32 %v685_v13, %v670_v11 }
 0x1f3   :  { %v687_v15 = vsel %vm625_vm0, %v686_v14, 0.0 }
 0x1f4   :  { %688 = vadd.xlane.f32.xlu1 %v687_v15 }
 0x281   :  { %v689_v16 = vpop.xlane.xlu1 %688 }
 0x282   :  { %690 = vst [vmem:[%s1056_s4] sm:$0x1] %v689_v16 }
 0x283   :  { %695 = vsyncpa [#allocation6], 1 }

</bundles_post_ra>
